<compile_context>
chip_gen: v7x
topology: tpu7x:2x2x1
jax: 0.10.0
libtpu: 0.0.40
codegen_flags: <defaults>
</compile_context>

<pallas_src>
import jax
import jax.numpy as jnp
from jax.experimental import pallas as pl
from jax.experimental.pallas import tpu as pltpu

# ----------------------------------------------------------------------------
# Model dimensions (from the PyTorch module)
# ----------------------------------------------------------------------------
LAYER_DIMS = [28 * 28, 128, 64, 12, 3, 12, 64, 128, 28 * 28]
N_LAYERS = len(LAYER_DIMS) - 1  # 8 Linear layers
IN_DIM = LAYER_DIMS[0]
OUT_DIM = LAYER_DIMS[-1]
HID = 128  # every hidden width (128/64/12/3) is zero-padded to 128 lanes

# Per-layer activation: ReLU after every Linear except the encoder output
# (layer index 3, 12->3) which has none, and the final layer which is Tanh.
ACTIVATIONS = ("relu", "relu", "relu", None, "relu", "relu", "relu", "tanh")

# Lane-padded widths (input/output stay 784, all hidden dims -> 128).
PADDED_DIMS = [IN_DIM] + [HID] * (N_LAYERS - 1) + [OUT_DIM]


# ----------------------------------------------------------------------------
# Pallas kernel: the whole encoder+decoder hot path (8 matmuls + activations)
# ----------------------------------------------------------------------------
def _autoencoder_kernel(x_ref, w_first_ref, w_mid_ref, w_last_ref,
                        b_mid_ref, b_last_ref, o_ref):
    # Layer 1: 784 -> 128 (padded), ReLU.  bf16 operands, f32 MXU accumulate.
    h = jnp.dot(x_ref[...].astype(jnp.bfloat16), w_first_ref[...],
                preferred_element_type=jnp.float32) + b_mid_ref[0]
    h = jnp.maximum(h, 0.0)

    # Layers 2..7: padded 128 -> 128 hidden layers.
    # ACTIVATIONS[1..6] = relu, relu, None (12->3 encoder output), relu, relu, relu
    for j in range(6):
        h = jnp.dot(h.astype(jnp.bfloat16), w_mid_ref[j],
                    preferred_element_type=jnp.float32) + b_mid_ref[j + 1]
        if ACTIVATIONS[j + 1] == "relu":
            h = jnp.maximum(h, 0.0)

    # Layer 8: 128 -> 784, Tanh.
    h = jnp.dot(h.astype(jnp.bfloat16), w_last_ref[...],
                preferred_element_type=jnp.float32) + b_last_ref[...]
    o_ref[...] = jnp.tanh(h).astype(o_ref.dtype)


# ----------------------------------------------------------------------------
# One-time parameter preparation (hoisted out of the forward call)
# ----------------------------------------------------------------------------
def prepare_params(params):
    """Zero-pad hidden dims to 128 lanes, cast weights to bf16, stack.

    Padded lanes carry exact zeros (zero weight rows/cols + zero bias pad), so
    they stay zero through every layer -- including the activation-free 12->3
    layer -- and the math matches the unpadded model exactly.
    Returns (w_first, w_mid, w_last, b_mid, b_last).
    """
    padded_w, padded_b = [], []
    for i, (w, b) in enumerate(params):
        in_d, out_d = w.shape
        pin, pout = PADDED_DIMS[i], PADDED_DIMS[i + 1]
        w_p = jnp.zeros((pin, pout), jnp.float32).at[:in_d, :out_d].set(
            w.astype(jnp.float32))
        b_p = jnp.zeros((pout,), jnp.float32).at[:out_d].set(
            b.reshape(-1).astype(jnp.float32))
        padded_w.append(w_p.astype(jnp.bfloat16))  # MXU-native operand
        padded_b.append(b_p)                       # bias add stays f32

    w_first = padded_w[0]                          # (784, 128) bf16
    w_mid = jnp.stack(padded_w[1:7])               # (6, 128, 128) bf16
    w_last = padded_w[7]                           # (128, 784) bf16
    b_mid = jnp.stack(padded_b[0:7])[:, None, :]   # (7, 1, 128) f32
    b_last = padded_b[7][None, :]                  # (1, 784) f32
    return w_first, w_mid, w_last, b_mid, b_last


# ----------------------------------------------------------------------------
# Batch tile selection: big tiles for HBM roofline, but keep the grid deep
# enough (>= MIN_GRID steps) so both v7x TensorCores get pipelined work.
# ----------------------------------------------------------------------------
def _pick_batch_tile(batch, cap=512, min_grid=8):
    if batch % 8 != 0:
        return batch  # odd/tiny batch: single full-extent block
    candidates = [tb for tb in range(8, min(cap, batch) + 1, 8)
                  if batch % tb == 0]
    if not candidates:
        return batch
    deep = [tb for tb in candidates if batch // tb >= min_grid]
    return max(deep) if deep else max(candidates)


# ----------------------------------------------------------------------------
# Forward wrapper (jit-compatible; prepared params are passed in, not rebuilt)
# ----------------------------------------------------------------------------
def autoencoder_forward(x, prepared, *, batch_tile=None, out_dtype=None):
    """Run the fused autoencoder forward pass as one Pallas kernel.

    Args:
      x: (B, 784) input (f32 or bf16; it is cast to bf16 for the MXU anyway).
      prepared: output of prepare_params(params).
      batch_tile: rows per grid step (default: auto, <= 512, grid depth >= 8).
      out_dtype: output dtype (default: x.dtype; pass bf16 to halve output
        HBM traffic when the consumer accepts it).
    """
    B, D = x.shape
    assert D == IN_DIM
    tb = batch_tile if batch_tile is not None else _pick_batch_tile(B)
    assert B % tb == 0, f"batch {B} must be divisible by batch_tile {tb}"
    out_dtype = out_dtype if out_dtype is not None else x.dtype

    w_first, w_mid, w_last, b_mid, b_last = prepared

    # Grid-invariant parameters: full-array blocks, SINGLE-buffered (fetched
    # once, resident in VMEM across the whole grid).
    def _const_spec(shape):
        nd = len(shape)
        return pl.BlockSpec(shape, lambda i, _nd=nd: (0,) * _nd,
                            pipeline_mode=pl.Buffered(1))

    in_specs = [
        pl.BlockSpec((tb, IN_DIM), lambda i: (i, 0)),   # x: tiled over batch
        _const_spec(w_first.shape),
        _const_spec(w_mid.shape),
        _const_spec(w_last.shape),
        _const_spec(b_mid.shape),
        _const_spec(b_last.shape),
    ]
    out_spec = pl.BlockSpec((tb, OUT_DIM), lambda i: (i, 0))

    # VMEM budget: double-buffered I/O tiles + single-buffered params +
    # headroom for in-kernel f32/bf16 intermediates; clamp to a range that is
    # safe on v5e (16 MiB scoped default, 128 MiB phys) and v7x (64 MiB phys).
    in_bytes = 2 * tb * IN_DIM * jnp.dtype(x.dtype).itemsize
    out_bytes = 2 * tb * OUT_DIM * jnp.dtype(out_dtype).itemsize
    param_bytes = sum(int(a.size) * a.dtype.itemsize for a in prepared)
    scratch_bytes = 3 * tb * OUT_DIM * 4
    vmem_limit = int(1.5 * (in_bytes + out_bytes + param_bytes + scratch_bytes))
    vmem_limit = min(max(vmem_limit, 16 * 1024 * 1024), 32 * 1024 * 1024)

    return pl.pallas_call(
        _autoencoder_kernel,
        out_shape=jax.ShapeDtypeStruct((B, OUT_DIM), out_dtype),
        grid_spec=pl.GridSpec(
            grid=(B // tb,),
            in_specs=in_specs,
            out_specs=out_spec,
        ),
        compiler_params=pltpu.CompilerParams(
            dimension_semantics=("parallel",),
            vmem_limit_bytes=vmem_limit,
        ),
    )(x, w_first, w_mid, w_last, b_mid, b_last)


# ----------------------------------------------------------------------------
# Deterministic parameter init (torch-Linear-like uniform scaling)
# ----------------------------------------------------------------------------
def init_params(key):
    params = []
    for i in range(N_LAYERS):
        fan_in, fan_out = LAYER_DIMS[i], LAYER_DIMS[i + 1]
        key, kw, kb = jax.random.split(key, 3)
        bound = 1.0 / jnp.sqrt(jnp.float32(fan_in))
        w = jax.random.uniform(kw, (fan_in, fan_out), jnp.float32,
                               minval=-bound, maxval=bound)
        b = jax.random.uniform(kb, (1, fan_out), jnp.float32,
                               minval=-bound, maxval=bound)
        params.append((w, b))
    return params


# Pure-JAX f32 reference (mirrors the PyTorch module exactly).
def reference_forward(x, params):
    h = x
    for layer, (w, b) in enumerate(params):
        h = h @ w + b
        act = ACTIVATIONS[layer]
        if act == "relu":
            h = jnp.maximum(h, 0.0)
        elif act == "tanh":
            h = jnp.tanh(h)
    return h


if __name__ == "__main__":
    key = jax.random.PRNGKey(0)
    key, kx = jax.random.split(key)

    B = 64  # small demo batch -> tb=8, grid=(8,): pipelined on all generations
    x = jax.random.normal(kx, (B, IN_DIM), dtype=jnp.float32)
    params = init_params(key)

    # Hoisted one-time padding/cast/stack, then a jitted forward.
    prepared = jax.tree_util.tree_map(jax.block_until_ready,
                                      prepare_params(params))
    fwd = jax.jit(autoencoder_forward)

    out = jax.block_until_ready(fwd(x, prepared))

    ref = reference_forward(x, params)
    assert out.shape == (B, OUT_DIM)
    # bf16 matmul operands with f32 accumulation vs. pure-f32 reference:
    # outputs are tanh-squashed to [-1, 1], so a few e-2 absolute tolerance.
    assert jnp.allclose(out, ref, rtol=3e-2, atol=3e-2), "mismatch vs reference"

    print("KERNEL_OK")
</pallas_src>

<mosaic_0001>
module attributes {stable_mosaic.version = 11 : i64} {
  func.func @_autoencoder_kernel(%arg0: i32, %arg1: memref<8x784xf32, #tpu.memory_space<vmem>>, %arg2: memref<784x128xbf16, #tpu.memory_space<vmem>>, %arg3: memref<6x128x128xbf16, #tpu.memory_space<vmem>>, %arg4: memref<128x784xbf16, #tpu.memory_space<vmem>>, %arg5: memref<7x1x128xf32, #tpu.memory_space<vmem>>, %arg6: memref<1x784xf32, #tpu.memory_space<vmem>>, %arg7: memref<8x784xf32, #tpu.memory_space<vmem>>) attributes {dimension_semantics = [#tpu.dimension_semantics<parallel>], iteration_bounds = array<i64: 8>, scalar_prefetch = 0 : i64, scratch_operands = 0 : i64, tpu.core_type = #tpu.core_type<tc>, window_params = [{transform_indices = @transform_0, window_bounds = array<i64: 8, 784>}, {pipeline_mode = #tpu.pipeline_mode<synchronous>, transform_indices = @transform_1, window_bounds = array<i64: 784, 128>}, {pipeline_mode = #tpu.pipeline_mode<synchronous>, transform_indices = @transform_2, window_bounds = array<i64: 6, 128, 128>}, {pipeline_mode = #tpu.pipeline_mode<synchronous>, transform_indices = @transform_3, window_bounds = array<i64: 128, 784>}, {pipeline_mode = #tpu.pipeline_mode<synchronous>, transform_indices = @transform_4, window_bounds = array<i64: 7, 1, 128>}, {pipeline_mode = #tpu.pipeline_mode<synchronous>, transform_indices = @transform_5, window_bounds = array<i64: 1, 784>}, {transform_indices = @transform_6, window_bounds = array<i64: 8, 784>}]} {
    %c0 = arith.constant 0 : index
    %c0_0 = arith.constant 0 : index
    %0 = vector.load %arg1[%c0, %c0_0] : memref<8x784xf32, #tpu.memory_space<vmem>>, vector<8x784xf32>
    %1 = arith.truncf %0 : vector<8x784xf32> to vector<8x784xbf16>
    %c0_1 = arith.constant 0 : index
    %c0_2 = arith.constant 0 : index
    %2 = vector.load %arg2[%c0_1, %c0_2] : memref<784x128xbf16, #tpu.memory_space<vmem>>, vector<784x128xbf16>
    %cst = arith.constant dense<0.000000e+00> : vector<8x128xf32>
    %3 = tpu.matmul %1, %2, %cst {dimension_numbers = #tpu.dot_dimension_numbers<[1], [0], [0], [1], [0, 0, 1, 1], [], []>} : vector<8x784xbf16>, vector<784x128xbf16>, vector<8x128xf32> -> vector<8x128xf32>
    %c0_3 = arith.constant 0 : index
    %c0_4 = arith.constant 0 : index
    %c0_5 = arith.constant 0 : index
    %4 = vector.load %arg5[%c0_3, %c0_4, %c0_5] : memref<7x1x128xf32, #tpu.memory_space<vmem>>, vector<1x1x128xf32>
    %5 = vector.shape_cast %4 : vector<1x1x128xf32> to vector<1x128xf32>
    %6 = vector.broadcast %5 : vector<1x128xf32> to vector<8x128xf32>
    %7 = arith.addf %3, %6 : vector<8x128xf32>
    %cst_6 = arith.constant 0.000000e+00 : f32
    %8 = vector.broadcast %cst_6 : f32 to vector<8x128xf32>
    %9 = arith.maximumf %7, %8 : vector<8x128xf32>
    %10 = arith.truncf %9 : vector<8x128xf32> to vector<8x128xbf16>
    %c0_7 = arith.constant 0 : index
    %c0_8 = arith.constant 0 : index
    %c0_9 = arith.constant 0 : index
    %11 = vector.load %arg3[%c0_7, %c0_8, %c0_9] : memref<6x128x128xbf16, #tpu.memory_space<vmem>>, vector<1x128x128xbf16>
    %12 = vector.shape_cast %11 : vector<1x128x128xbf16> to vector<128x128xbf16>
    %cst_10 = arith.constant dense<0.000000e+00> : vector<8x128xf32>
    %13 = tpu.matmul %10, %12, %cst_10 {dimension_numbers = #tpu.dot_dimension_numbers<[1], [0], [0], [1], [0, 0, 1, 1], [], []>} : vector<8x128xbf16>, vector<128x128xbf16>, vector<8x128xf32> -> vector<8x128xf32>
    %c1 = arith.constant 1 : index
    %c0_11 = arith.constant 0 : index
    %c0_12 = arith.constant 0 : index
    %14 = vector.load %arg5[%c1, %c0_11, %c0_12] : memref<7x1x128xf32, #tpu.memory_space<vmem>>, vector<1x1x128xf32>
    %15 = vector.shape_cast %14 : vector<1x1x128xf32> to vector<1x128xf32>
    %16 = vector.broadcast %15 : vector<1x128xf32> to vector<8x128xf32>
    %17 = arith.addf %13, %16 : vector<8x128xf32>
    %cst_13 = arith.constant 0.000000e+00 : f32
    %18 = vector.broadcast %cst_13 : f32 to vector<8x128xf32>
    %19 = arith.maximumf %17, %18 : vector<8x128xf32>
    %20 = arith.truncf %19 : vector<8x128xf32> to vector<8x128xbf16>
    %c1_14 = arith.constant 1 : index
    %c0_15 = arith.constant 0 : index
    %c0_16 = arith.constant 0 : index
    %21 = vector.load %arg3[%c1_14, %c0_15, %c0_16] : memref<6x128x128xbf16, #tpu.memory_space<vmem>>, vector<1x128x128xbf16>
    %22 = vector.shape_cast %21 : vector<1x128x128xbf16> to vector<128x128xbf16>
    %cst_17 = arith.constant dense<0.000000e+00> : vector<8x128xf32>
    %23 = tpu.matmul %20, %22, %cst_17 {dimension_numbers = #tpu.dot_dimension_numbers<[1], [0], [0], [1], [0, 0, 1, 1], [], []>} : vector<8x128xbf16>, vector<128x128xbf16>, vector<8x128xf32> -> vector<8x128xf32>
    %c2 = arith.constant 2 : index
    %c0_18 = arith.constant 0 : index
    %c0_19 = arith.constant 0 : index
    %24 = vector.load %arg5[%c2, %c0_18, %c0_19] : memref<7x1x128xf32, #tpu.memory_space<vmem>>, vector<1x1x128xf32>
    %25 = vector.shape_cast %24 : vector<1x1x128xf32> to vector<1x128xf32>
    %26 = vector.broadcast %25 : vector<1x128xf32> to vector<8x128xf32>
    %27 = arith.addf %23, %26 : vector<8x128xf32>
    %cst_20 = arith.constant 0.000000e+00 : f32
    %28 = vector.broadcast %cst_20 : f32 to vector<8x128xf32>
    %29 = arith.maximumf %27, %28 : vector<8x128xf32>
    %30 = arith.truncf %29 : vector<8x128xf32> to vector<8x128xbf16>
    %c2_21 = arith.constant 2 : index
    %c0_22 = arith.constant 0 : index
    %c0_23 = arith.constant 0 : index
    %31 = vector.load %arg3[%c2_21, %c0_22, %c0_23] : memref<6x128x128xbf16, #tpu.memory_space<vmem>>, vector<1x128x128xbf16>
    %32 = vector.shape_cast %31 : vector<1x128x128xbf16> to vector<128x128xbf16>
    %cst_24 = arith.constant dense<0.000000e+00> : vector<8x128xf32>
    %33 = tpu.matmul %30, %32, %cst_24 {dimension_numbers = #tpu.dot_dimension_numbers<[1], [0], [0], [1], [0, 0, 1, 1], [], []>} : vector<8x128xbf16>, vector<128x128xbf16>, vector<8x128xf32> -> vector<8x128xf32>
    %c3 = arith.constant 3 : index
    %c0_25 = arith.constant 0 : index
    %c0_26 = arith.constant 0 : index
    %34 = vector.load %arg5[%c3, %c0_25, %c0_26] : memref<7x1x128xf32, #tpu.memory_space<vmem>>, vector<1x1x128xf32>
    %35 = vector.shape_cast %34 : vector<1x1x128xf32> to vector<1x128xf32>
    %36 = vector.broadcast %35 : vector<1x128xf32> to vector<8x128xf32>
    %37 = arith.addf %33, %36 : vector<8x128xf32>
    %38 = arith.truncf %37 : vector<8x128xf32> to vector<8x128xbf16>
    %c3_27 = arith.constant 3 : index
    %c0_28 = arith.constant 0 : index
    %c0_29 = arith.constant 0 : index
    %39 = vector.load %arg3[%c3_27, %c0_28, %c0_29] : memref<6x128x128xbf16, #tpu.memory_space<vmem>>, vector<1x128x128xbf16>
    %40 = vector.shape_cast %39 : vector<1x128x128xbf16> to vector<128x128xbf16>
    %cst_30 = arith.constant dense<0.000000e+00> : vector<8x128xf32>
    %41 = tpu.matmul %38, %40, %cst_30 {dimension_numbers = #tpu.dot_dimension_numbers<[1], [0], [0], [1], [0, 0, 1, 1], [], []>} : vector<8x128xbf16>, vector<128x128xbf16>, vector<8x128xf32> -> vector<8x128xf32>
    %c4 = arith.constant 4 : index
    %c0_31 = arith.constant 0 : index
    %c0_32 = arith.constant 0 : index
    %42 = vector.load %arg5[%c4, %c0_31, %c0_32] : memref<7x1x128xf32, #tpu.memory_space<vmem>>, vector<1x1x128xf32>
    %43 = vector.shape_cast %42 : vector<1x1x128xf32> to vector<1x128xf32>
    %44 = vector.broadcast %43 : vector<1x128xf32> to vector<8x128xf32>
    %45 = arith.addf %41, %44 : vector<8x128xf32>
    %cst_33 = arith.constant 0.000000e+00 : f32
    %46 = vector.broadcast %cst_33 : f32 to vector<8x128xf32>
    %47 = arith.maximumf %45, %46 : vector<8x128xf32>
    %48 = arith.truncf %47 : vector<8x128xf32> to vector<8x128xbf16>
    %c4_34 = arith.constant 4 : index
    %c0_35 = arith.constant 0 : index
    %c0_36 = arith.constant 0 : index
    %49 = vector.load %arg3[%c4_34, %c0_35, %c0_36] : memref<6x128x128xbf16, #tpu.memory_space<vmem>>, vector<1x128x128xbf16>
    %50 = vector.shape_cast %49 : vector<1x128x128xbf16> to vector<128x128xbf16>
    %cst_37 = arith.constant dense<0.000000e+00> : vector<8x128xf32>
    %51 = tpu.matmul %48, %50, %cst_37 {dimension_numbers = #tpu.dot_dimension_numbers<[1], [0], [0], [1], [0, 0, 1, 1], [], []>} : vector<8x128xbf16>, vector<128x128xbf16>, vector<8x128xf32> -> vector<8x128xf32>
    %c5 = arith.constant 5 : index
    %c0_38 = arith.constant 0 : index
    %c0_39 = arith.constant 0 : index
    %52 = vector.load %arg5[%c5, %c0_38, %c0_39] : memref<7x1x128xf32, #tpu.memory_space<vmem>>, vector<1x1x128xf32>
    %53 = vector.shape_cast %52 : vector<1x1x128xf32> to vector<1x128xf32>
    %54 = vector.broadcast %53 : vector<1x128xf32> to vector<8x128xf32>
    %55 = arith.addf %51, %54 : vector<8x128xf32>
    %cst_40 = arith.constant 0.000000e+00 : f32
    %56 = vector.broadcast %cst_40 : f32 to vector<8x128xf32>
    %57 = arith.maximumf %55, %56 : vector<8x128xf32>
    %58 = arith.truncf %57 : vector<8x128xf32> to vector<8x128xbf16>
    %c5_41 = arith.constant 5 : index
    %c0_42 = arith.constant 0 : index
    %c0_43 = arith.constant 0 : index
    %59 = vector.load %arg3[%c5_41, %c0_42, %c0_43] : memref<6x128x128xbf16, #tpu.memory_space<vmem>>, vector<1x128x128xbf16>
    %60 = vector.shape_cast %59 : vector<1x128x128xbf16> to vector<128x128xbf16>
    %cst_44 = arith.constant dense<0.000000e+00> : vector<8x128xf32>
    %61 = tpu.matmul %58, %60, %cst_44 {dimension_numbers = #tpu.dot_dimension_numbers<[1], [0], [0], [1], [0, 0, 1, 1], [], []>} : vector<8x128xbf16>, vector<128x128xbf16>, vector<8x128xf32> -> vector<8x128xf32>
    %c6 = arith.constant 6 : index
    %c0_45 = arith.constant 0 : index
    %c0_46 = arith.constant 0 : index
    %62 = vector.load %arg5[%c6, %c0_45, %c0_46] : memref<7x1x128xf32, #tpu.memory_space<vmem>>, vector<1x1x128xf32>
    %63 = vector.shape_cast %62 : vector<1x1x128xf32> to vector<1x128xf32>
    %64 = vector.broadcast %63 : vector<1x128xf32> to vector<8x128xf32>
    %65 = arith.addf %61, %64 : vector<8x128xf32>
    %cst_47 = arith.constant 0.000000e+00 : f32
    %66 = vector.broadcast %cst_47 : f32 to vector<8x128xf32>
    %67 = arith.maximumf %65, %66 : vector<8x128xf32>
    %68 = arith.truncf %67 : vector<8x128xf32> to vector<8x128xbf16>
    %c0_48 = arith.constant 0 : index
    %c0_49 = arith.constant 0 : index
    %69 = vector.load %arg4[%c0_48, %c0_49] : memref<128x784xbf16, #tpu.memory_space<vmem>>, vector<128x784xbf16>
    %cst_50 = arith.constant dense<0.000000e+00> : vector<8x784xf32>
    %70 = tpu.matmul %68, %69, %cst_50 {dimension_numbers = #tpu.dot_dimension_numbers<[1], [0], [0], [1], [0, 0, 1, 1], [], []>} : vector<8x128xbf16>, vector<128x784xbf16>, vector<8x784xf32> -> vector<8x784xf32>
    %c0_51 = arith.constant 0 : index
    %c0_52 = arith.constant 0 : index
    %71 = vector.load %arg6[%c0_51, %c0_52] : memref<1x784xf32, #tpu.memory_space<vmem>>, vector<1x784xf32>
    %72 = vector.broadcast %71 : vector<1x784xf32> to vector<8x784xf32>
    %73 = arith.addf %70, %72 : vector<8x784xf32>
    %74 = math.tanh %73 : vector<8x784xf32>
    %c0_53 = arith.constant 0 : index
    %c0_54 = arith.constant 0 : index
    %75 = vector.load %arg7[%c0_53, %c0_54] : memref<8x784xf32, #tpu.memory_space<vmem>>, vector<8x784xf32>
    tpu.vector_store %arg7[%c0_53, %c0_54], %74 {strides = array<i32>} : memref<8x784xf32, #tpu.memory_space<vmem>>, vector<8x784xf32>,
    return
  }
  func.func @transform_0(%arg0: i32) -> (i32, i32) {
    %c0_i32 = arith.constant 0 : i32
    %c0_i32_0 = arith.constant 0 : i32
    return %arg0, %c0_i32 : i32, i32
  }
  func.func @transform_1(%arg0: i32) -> (i32, i32) {
    %c0_i32 = arith.constant 0 : i32
    %c0_i32_0 = arith.constant 0 : i32
    %c0_i32_1 = arith.constant 0 : i32
    return %c0_i32, %c0_i32_0 : i32, i32
  }
  func.func @transform_2(%arg0: i32) -> (i32, i32, i32) {
    %c0_i32 = arith.constant 0 : i32
    %c0_i32_0 = arith.constant 0 : i32
    %c0_i32_1 = arith.constant 0 : i32
    %c0_i32_2 = arith.constant 0 : i32
    return %c0_i32, %c0_i32_0, %c0_i32_1 : i32, i32, i32
  }
  func.func @transform_3(%arg0: i32) -> (i32, i32) {
    %c0_i32 = arith.constant 0 : i32
    %c0_i32_0 = arith.constant 0 : i32
    %c0_i32_1 = arith.constant 0 : i32
    return %c0_i32, %c0_i32_0 : i32, i32
  }
  func.func @transform_4(%arg0: i32) -> (i32, i32, i32) {
    %c0_i32 = arith.constant 0 : i32
    %c0_i32_0 = arith.constant 0 : i32
    %c0_i32_1 = arith.constant 0 : i32
    %c0_i32_2 = arith.constant 0 : i32
    return %c0_i32, %c0_i32_0, %c0_i32_1 : i32, i32, i32
  }
  func.func @transform_5(%arg0: i32) -> (i32, i32) {
    %c0_i32 = arith.constant 0 : i32
    %c0_i32_0 = arith.constant 0 : i32
    %c0_i32_1 = arith.constant 0 : i32
    return %c0_i32, %c0_i32_0 : i32, i32
  }
  func.func @transform_6(%arg0: i32) -> (i32, i32) {
    %c0_i32 = arith.constant 0 : i32
    %c0_i32_0 = arith.constant 0 : i32
    return %arg0, %c0_i32 : i32, i32
  }
}

</mosaic_0001>

<bundles_post_ra>
// kernel: autoencoder_forward.1
= control target key start
LH: loop header
LB: loop body
LE: loop exit
PB: predicated region body
PF: predicated region fallthrough
CT: control target
= control target key end

     0   :  { %11 = vsyncpa [#allocation3], 0  ;;  %s3701_s0 = inlined_call_operand.vmem [shape: f32[64,784], index: 0, kind: input, shape index: {}]   ;;  %s3702_s1 = inlined_call_operand.vmem [shape: bf16[784,128], index: 1, kind: input, shape index: {}]   ;;  %s3703_s2 = inlined_call_operand.hbm [shape: bf16[6,128,128], index: 2, kind: input, shape index: {}]   ;;  %s3704_s3 = inlined_call_operand.vmem [shape: bf16[128,784], index: 3, kind: input, shape index: {}]   ;;  %s3705_s4 = inlined_call_operand.vmem [shape: f32[7,1,128], index: 4, kind: input, shape index: {}]   ;;  %s3706_s5 = inlined_call_operand.hbm [shape: f32[1,784], index: 5, kind: input, shape index: {}]   ;;  %s3707_s6 = inlined_call_operand.hbm [shape: f32[64,784], index: 6, kind: output, shape index: {}]  }
   0x1   :  { %12 = vsyncpa [#allocation6], 0 }
   0x2   :  { %13 = vsyncpa [#allocation4], 0 }
   0x3   :  { %15 = vsyncpa [#allocation4 + $0x1], 0  ;;  %s3094_s21 = smov 0   ;;  %s3096_s22 = smov 0  }
   0x4   :  { %s3098_s23 = smov 0   ;;  %s3100_s24 = smov 0  }
   0x5 LB: > { %s3115_s25 = sadd.s32 4294967295, %s3049_s24   ;;  %s2208_s26 = sadd.s32 4294967294, %s3049_s24   ;;  %s3049_s24 = sphi %s3100_s24, %s3725_s24   ;;  %s3045_s23 = sphi %s3098_s23, %s3724_s23   ;;  %s3041_s22 = sphi %s3096_s22, %s3723_s22   ;;  %s3037_s21 = sphi %s3094_s21, %s3722_s21  }
   0x6   : > { %s3119_s27 = sadd.s32 1, %s3049_s24   ;;  %s159_s28 = sadd.s32 1, %s3045_s23 }
   0x7   : > { %s156_s29 = ssub.s32 %s3049_s24, %s3119_s27  ;;  %p169_p0 = scmp.ne.s32.totalorder %s3045_s23, %s3041_s22 }
   0x8   : > { %p157_p1 = scmp.eq.s32.totalorder %s156_s29, 0  ;;  %p170_p2 = scmp.eq.s32.totalorder %s3115_s25, 7 }
   0x9   : > { %p175_p3 = scmp.ne.s32.totalorder %s3041_s22, %s3037_s21  ;;  %p176_p4 = scmp.eq.s32.totalorder %s2208_s26, 7 }
   0xa   : > { %s3130_s30 = scalar_select %p157_p1, %s3045_s23, %s159_s28  }
   0xb   : > { %p3132_p5 = por %p170_p2, %p169_p0  ;;  %p3136_p6 = por %p176_p4, %p175_p3 }
   0xc   : > { %p2209_p7 = scmp.ge.s32.totalorder %s3049_s24, 1  ;;  %p183_p8 = scmp.lt.s32.totalorder %s3049_s24, 9 }
   0xd   : > { %s3711_s7 = scalar_select %p3132_p5, 1, 0 }
   0xe   : > { %s3712_s8 = scalar_select %p3136_p6, 1, 0 }
   0xf   : > { %p3708_p9 = scmp.eq.s32.totalorder %s3115_s25, 0  ;;  %p3143_p10 = pnand %p2209_p7, %p183_p8 }
  0x10   : > { %s3051_s10 = smov [#allocation2]   ;;  %s3052_s13 = smov [#allocation5]  }
  0x11   : > { %s3713_s9 = scalar_select %p3143_p10, 1, 0 }
  0x12   : > { %s198_s11 = sshll.u32 %s3051_s10, 4  ;;  %p2677_p11 = pneg %p3143_p10  ;;  %s199_s11 = int_to_ptr.vmem [resolvable:$true] %s198_s11 }
  0x13   : > { %s218_s14 = sshll.u32 %s3052_s13, 4  ;;  %s2923_s17 = scalar_lea.hbm %s3703_s2, 6144  ;;  %s3155_s14 = int_to_ptr.vmem [resolvable:$true] %s218_s14 }
  0x14   : > { %p3151_p12 = pnand %p3708_p9, %p2677_p11  ;;  %p2924_p13 = scmp.ne.s32.totalorder %s3703_s2, %s2923_s17 }
  0x15   : > { %p2930_p3 = scmp.lt.u32.totalorder %s2923_s17, %s3703_s2 }
  0x16   : > { %p2925_p0 = pneg %p3151_p12 }
  0x18   : > { %p2926_p1 = pnand %p2925_p0, %p2924_p13 }
  0x1a   : > { %p2927_p2 = pneg %p2926_p1 }
  0x1c   : > { %p2932_p4 = pnand %p2930_p3, %p2927_p2 }
  0x1e   : > { %2935 = shalt.err (!%p2932_p4)
}
  0x1f   : > { %s2936_s28 = scalar_lea.vmem %s199_s11, 6144  ;;  %p2944_p9 = scmp.lt.s32.totalorder %s199_s11, %s199_s11 }
  0x20   : > { %p2937_p7 = scmp.ne.s32.totalorder %s199_s11, %s2936_s28  ;;  %p2945_p6 = scmp.lt.s32.totalorder %s2936_s28, %s2936_s28 }
  0x22   : > { %p2939_p8 = pnand %p2937_p7, %p2925_p0  ;;  %p2946_p5 = por %p2945_p6, %p2944_p9 }
  0x24   : > { %p2940_p11 = pneg %p2939_p8 }
  0x26   : > { %p2947_p10 = pnand %p2946_p5, %p2940_p11 }
  0x28   : > { %2950 = shalt.err (!%p2947_p10)
}
  0x29   : > { %s3053_s29 = smov 64   ;;  %s3054_s10 = smov 4  }
  0x2a   : > { %2680 = dma.hbm_to_vmem [thread:$0]  (!%p3151_p12), %s3703_s2, 6144, %s199_s11, [#allocation3], %s3053_s29, %s3053_s29, %s3054_s10  }
  0x2b   : > { %s2951_s18 = scalar_lea.hbm %s3706_s5, 112 }
  0x2c   : > { %p2952_p13 = scmp.ne.s32.totalorder %s3706_s5, %s2951_s18  ;;  %p2958_p9 = scmp.lt.u32.totalorder %s2951_s18, %s3706_s5 }
  0x2e   : > { %p2954_p5 = pnand %p2952_p13, %p2925_p0 }
  0x30   : > { %p2955_p6 = pneg %p2954_p5 }
  0x32   : > { %p2960_p10 = pnand %p2958_p9, %p2955_p6 }
  0x34   : > { %2963 = shalt.err (!%p2960_p10)
}
  0x35   : > { %s2964_s11 = scalar_lea.vmem %s3155_s14, 112  ;;  %s2971_s29 = scalar_lea.vmem %s3155_s14, 128 }
  0x36   : > { %p2965_p1 = scmp.ne.s32.totalorder %s3155_s14, %s2964_s11  ;;  %p2972_p4 = scmp.lt.s32.totalorder %s3155_s14, %s3155_s14 }
  0x37   : > { %p2973_p7 = scmp.lt.s32.totalorder %s2971_s29, %s2964_s11 }
  0x38   : > { %p2967_p2 = pnand %p2965_p1, %p2925_p0 }
  0x39   : > { %p2974_p8 = por %p2973_p7, %p2972_p4 }
  0x3a   : > { %p2968_p3 = pneg %p2967_p2 }
  0x3c   : > { %p2975_p11 = pnand %p2974_p8, %p2968_p3 }
  0x3e   : > { %2978 = shalt.err (!%p2975_p11)
}
  0x3f   : > { %2683 = dma.hbm_to_vmem [thread:$0]  (!%p3151_p12), %s3706_s5, 112, %s3155_s14, [#allocation6]  }
  0x40   : > { %p3715_p13 = scmp.ne.s32.totalorder %s3713_s9, 0 }
  0x41   : > { %p3716_p0 = scmp.eq.s32.totalorder (!%p3715_p13), %s3115_s25, 0 }
  0x42   : > { %239 = sbr.rel (%p3715_p13) target bundleno = 1944 (0x798), region = 44 }
  0x49   : > { %3024 = dma.done.wait (%p3716_p0), [#allocation3], 6144   ;;  %p3717_p5 = pmov %p3716_p0 }
  0x4a   : > { %p3718_p6 = pmov %p3716_p0 }
  0x4b   : > { %3026 = vsyncadd (%p3717_p5), [#allocation3], 4294961152 }
  0x4c   : > { %3028 = dma.done.wait (%p3718_p6), [#allocation6], 112   ;;  %p3719_p9 = pmov %p3716_p0 }
  0x4d   : > { %v2732_v0 = vld [vmem:[%s3702_s1 + $0x40] sm:$0xff]   ;;  %v2736_v4 = vld [vmem:[%s3702_s1 + $0x48] sm:$0xff]   ;;  %v2740_v8 = vld [vmem:[%s3702_s1 + $0x50] sm:$0xff]   ;;  %p273_p12 = scmp.lt.s32.totalorder %s3115_s25, 7  ;;  %v3055_v44 = vmov 0.0   ;;  %vm3056_vm0 = vmmov 0  }
  0x4e   : > { %3030 = vsyncadd (%p3719_p9), [#allocation6], 4294967184  ;;  %v2733_v1 = vld [vmem:[%s3702_s1] sm:$0xff]   ;;  %2387 = vmatprep.subr.bf16.mxu0 %v2732_v0  ;;  %v2737_v5 = vld [vmem:[%s3702_s1 + $0x8] sm:$0xff]   ;;  %vm692_vm1 = vcmask 130048   ;;  %s270_s19 = sand.u32 1, %s3041_s22  }
  0x4f   : > { %v2734_v2 = vld [vmem:[%s3702_s1 + $0xc0] sm:$0xff]   ;;  %2388 = vmatpush3.bf16.msra.mxu0 %v2733_v1  ;;  %v2738_v6 = vld [vmem:[%s3702_s1 + $0xc8] sm:$0xff]   ;;  %v2741_v9 = vld [vmem:[%s3702_s1 + $0x10] sm:$0xff]   ;;  %s274_s29 = scalar_select %p273_p12, %s3115_s25, 7 }
  0x50   : > { %v2735_v3 = vld [vmem:[%s3702_s1 + $0x80] sm:$0xff]   ;;  %2409 = vmatprep.subr.bf16.mxu1 %v2734_v2  ;;  %2389 = vmatprep.subr.bf16.mxu0 %v2736_v4  ;;  %v2739_v7 = vld [vmem:[%s3702_s1 + $0x88] sm:$0xff]   ;;  %v2742_v10 = vld [vmem:[%s3702_s1 + $0xd0] sm:$0xff]   ;;  %s2666_s26 = smul.u32 896, %s3115_s25  ;;  %s2113_s25 = scalar_lea.sflag [#allocation4], %s270_s19 }
  0x51   : > { %2410 = vmatpush3.bf16.msra.mxu1 %v2735_v3  ;;  %v2743_v11 = vld [vmem:[%s3702_s1 + $0x90] sm:$0xff]   ;;  %v2744_v12 = vld [vmem:[%s3702_s1 + $0x58] sm:$0xff]   ;;  %v2748_v16 = vld [vmem:[%s3702_s1 + $0x60] sm:$0xff]   ;;  %s2665_s18 = smul.u32 56, %s274_s29  ;;  %p3720_p1 = scmp.ne.s32.totalorder %s3711_s7, 0 }
  0x52   : > { %2411 = vmatprep.subr.bf16.mxu1 %v2738_v6  ;;  %v2745_v13 = vld [vmem:[%s3702_s1 + $0x18] sm:$0xff]   ;;  %v2749_v17 = vld [vmem:[%s3702_s1 + $0x20] sm:$0xff]   ;;  %v2752_v20 = vld [vmem:[%s3702_s1 + $0x68] sm:$0xff]   ;;  %s3654_s13 = scalar_lea.hbm %s3707_s6, %s2666_s26 }
  0x53   : > { %2390 = vmatpush3.bf16.msra.mxu0 %v2737_v5  ;;  %v2746_v14 = vld [vmem:[%s3702_s1 + $0xd8] sm:$0xff]   ;;  %v2750_v18 = vld [vmem:[%s3702_s1 + $0xe0] sm:$0xff]   ;;  %v2753_v21 = vld [vmem:[%s3702_s1 + $0x28] sm:$0xff]   ;;  %s3307_s14 = scalar_lea.vmem %s3701_s0, %s2665_s18  ;;  %s2664_s18 = smul.u32 56, %s270_s19 }
  0x54   : > { %2391 = vmatprep.subr.bf16.mxu0 %v2740_v8  ;;  %v2747_v15 = vld [vmem:[%s3702_s1 + $0x98] sm:$0xff]   ;;  %v2751_v19 = vld [vmem:[%s3702_s1 + $0xa0] sm:$0xff]   ;;  %v2754_v22 = vld [vmem:[%s3702_s1 + $0xe8] sm:$0xff]  }
  0x55   : > { %2412 = vmatpush3.bf16.msra.mxu1 %v2739_v7  ;;  %v2755_v23 = vld [vmem:[%s3702_s1 + $0xa8] sm:$0xff]   ;;  %v2756_v24 = vld [vmem:[%s3702_s1 + $0x70] sm:$0xff]   ;;  %v2760_v28 = vld [vmem:[%s3702_s1 + $0x78] sm:$0xff]   ;;  %s3642_s20 = scalar_lea.vmem [#allocation7], %s2664_s18 }
  0x56   : > { %2413 = vmatprep.subr.bf16.mxu1 %v2742_v10  ;;  %v2757_v25 = vld [vmem:[%s3702_s1 + $0x30] sm:$0xff]   ;;  %v2761_v29 = vld [vmem:[%s3702_s1 + $0x38] sm:$0xff]   ;;  %v280_v31 = vld [vmem:[%s3307_s14 + $0x8] sm:$0xff]  ;;  %s2127_s28 = sshll.u32 %s3642_s20, 4  ;;  %s3656_s28 = int_to_ptr.vmem [resolvable:$true] %s2127_s28 }
  0x57   : > { %2392 = vmatpush3.bf16.msra.mxu0 %v2741_v9  ;;  %v2758_v26 = vld [vmem:[%s3702_s1 + $0xf0] sm:$0xff]   ;;  %v2762_v30 = vld [vmem:[%s3702_s1 + $0xf8] sm:$0xff]   ;;  %v287_v32 = vpack.c.bf16 %v280_v31, %v280_v31  ;;  %v279_v34 = vld [vmem:[%s3307_s14] sm:$0xff]  ;;  %s2979_s12 = scalar_lea.vmem %s3656_s28, 896 }
  0x58   : > { %2393 = vmatprep.subr.bf16.mxu0 %v2744_v12  ;;  %v2759_v27 = vld [vmem:[%s3702_s1 + $0xb0] sm:$0xff]   ;;  %v2763_v33 = vld [vmem:[%s3702_s1 + $0xb8] sm:$0xff]   ;;  %v286_v35 = vpack.c.bf16 %v279_v34, %v279_v34  ;;  %v2764_v36 = vld [vmem:[%s3702_s1 + $0x140] sm:$0xff]   ;;  %p2980_p10 = scmp.ne.s32.totalorder %s3656_s28, %s2979_s12 }
  0x59   : > { %2414 = vmatpush3.bf16.msra.mxu1 %v2743_v11  ;;  %v282_v37 = vld [vmem:[%s3307_s14 + $0x18] sm:$0xff]  ;;  %728 = vmatprep.mubr.bf16.mxu0 %v287_v32  ;;  %v2765_v39 = vld [vmem:[%s3702_s1 + $0x100] sm:$0xff]   ;;  %v281_v40 = vld [vmem:[%s3307_s14 + $0x10] sm:$0xff] }
  0x5a   : > { %2415 = vmatprep.subr.bf16.mxu1 %v2746_v14  ;;  %v289_v38 = vpack.c.bf16 %v282_v37, %v282_v37  ;;  %v288_v41 = vpack.c.bf16 %v281_v40, %v281_v40  ;;  %v2766_v42 = vld [vmem:[%s3702_s1 + $0x148] sm:$0xff]   ;;  %v2768_v45 = vld [vmem:[%s3702_s1 + $0x150] sm:$0xff]   ;;  %v2770_v47 = vld [vmem:[%s3702_s1 + $0x158] sm:$0xff]   ;;  %p2981_p2 = pnand %p2980_p10, %p3720_p1 }
  0x5b   : > { %2394 = vmatpush3.bf16.msra.mxu0 %v2745_v13  ;;  %v2767_v43 = vld [vmem:[%s3702_s1 + $0x108] sm:$0xff]   ;;  %v2769_v46 = vld [vmem:[%s3702_s1 + $0x110] sm:$0xff]   ;;  %v2771_v48 = vld [vmem:[%s3702_s1 + $0x118] sm:$0xff]  }
  0x5c   : > { %2395 = vmatprep.subr.bf16.mxu0 %v2748_v16  ;;  %768 = vmatprep.mubr.bf16.mxu1 %v289_v38  ;;  %v2772_v49 = vld [vmem:[%s3702_s1 + $0x160] sm:$0xff]   ;;  %v2774_v51 = vld [vmem:[%s3702_s1 + $0x168] sm:$0xff]   ;;  %v2776_v55 = vld [vmem:[%s3702_s1 + $0x170] sm:$0xff]   ;;  %p2982_p3 = pneg %p2981_p2 }
  0x5d   : > { %2416 = vmatpush3.bf16.msra.mxu1 %v2747_v15  ;;  %v2773_v50 = vld [vmem:[%s3702_s1 + $0x120] sm:$0xff]   ;;  %v2775_v52 = vld [vmem:[%s3702_s1 + $0x128] sm:$0xff]   ;;  %v285_v57 = vld [vmem:[%s3307_s14 + $0x30] sm:$0xff] }
  0x5e   : > { %2417 = vmatprep.subr.bf16.mxu1 %v2750_v18  ;;  %v2780_v53 = vld [vmem:[%s3702_s1 + $0x180] sm:$0xff]   ;;  %v284_v54 = vld [vmem:[%s3307_s14 + $0x28] sm:$0xff]  ;;  %v292_v58 = vpack.c.bf16 %v285_v57, %v285_v57  ;;  %v2777_v59 = vld [vmem:[%s3702_s1 + $0x130] sm:$0xff]  }
  0x5f   : > { %2396 = vmatpush3.bf16.msra.mxu0 %v2749_v17  ;;  %v291_v56 = vpack.c.bf16 %v284_v54, %v284_v54  ;;  %v2778_v60 = vld [vmem:[%s3702_s1 + $0x178] sm:$0xff]   ;;  %v283_v62 = vld [vmem:[%s3307_s14 + $0x20] sm:$0xff]  ;;  %v2782_v1 = vld [vmem:[#allocation2 + $0x8] sm:$0xff]   ;;  %s3058_s14 = smov [#allocation7]  }
  0x60   : > { %2397 = vmatprep.subr.bf16.mxu0 %v2752_v20  ;;  %v2779_v61 = vld [vmem:[%s3702_s1 + $0x138] sm:$0xff]   ;;  %v290_v63 = vpack.c.bf16 %v283_v62, %v283_v62  ;;  %v2781_v0 = vld [vmem:[#allocation2] sm:$0xff]   ;;  %v2783_v2 = vld [vmem:[#allocation2 + $0x10] sm:$0xff]   ;;  %s2983_s29 = sshll.u32 %s3058_s14, 4  ;;  %s2984_s29 = int_to_ptr.vmem [resolvable:$false] %s2983_s29 }
  0x61   : > { %2418 = vmatpush3.bf16.msra.mxu1 %v2751_v19  ;;  %v2784_v3 = vld [vmem:[#allocation2 + $0x18] sm:$0xff]   ;;  %v2785_v4 = vld [vmem:[#allocation2 + $0x20] sm:$0xff]   ;;  %v2786_v5 = vld [vmem:[#allocation2 + $0x28] sm:$0xff]   ;;  %s2985_s15 = scalar_lea.vmem %s2984_s29, 1792  ;;  %p2986_p4 = scmp.lt.s32.totalorder %s3656_s28, %s2984_s29 }
  0x62   : > { %2419 = vmatprep.subr.bf16.mxu1 %v2754_v22  ;;  %v2787_v6 = vld [vmem:[#allocation2 + $0x30] sm:$0xff]   ;;  %v2788_v7 = vld [vmem:[#allocation2 + $0x38] sm:$0xff]   ;;  %v2789_v8 = vld [vmem:[#allocation2 + $0x40] sm:$0xff]   ;;  %p2987_p7 = scmp.lt.s32.totalorder %s2985_s15, %s2979_s12 }
  0x63   : > { %2398 = vmatpush3.bf16.msra.mxu0 %v2753_v21  ;;  %v2790_v9 = vld [vmem:[#allocation2 + $0x48] sm:$0xff]   ;;  %v2791_v10 = vld [vmem:[#allocation2 + $0x50] sm:$0xff]   ;;  %v2792_v11 = vld [vmem:[#allocation2 + $0x58] sm:$0xff]  }
  0x64   : > { %2399 = vmatprep.subr.bf16.mxu0 %v2756_v24  ;;  %v2793_v12 = vld [vmem:[#allocation2 + $0x60] sm:$0xff]   ;;  %v2794_v13 = vld [vmem:[#allocation2 + $0x68] sm:$0xff]   ;;  %v2795_v40 = vld [vmem:[#allocation2 + $0x70] sm:$0xff]   ;;  %p2988_p8 = por %p2987_p7, %p2986_p4 }
  0x65   : > { %2420 = vmatpush3.bf16.msra.mxu1 %v2755_v23  ;;  %v2217_v15 = vld [vmem:[%s3705_s4] ss:$0 sm:$0xff]  ;;  %v2803_v57 = vld [vmem:[#allocation2 + $0xb0] sm:$0xff]   ;;  %v2808_v62 = vld [vmem:[#allocation2 + $0xd8] sm:$0xff]  }
  0x66   : > { %2421 = vmatprep.subr.bf16.mxu1 %v2758_v26  ;;  %p2989_p11 = pnand %p2988_p8, %p2982_p3 }
  0x67   : > { %2400 = vmatpush3.bf16.msra.mxu0 %v2757_v25 }
  0x68   : > { %2401 = vmatprep.subr.bf16.mxu0 %v2760_v28 }
  0x69   : > { %2422 = vmatpush3.bf16.msra.mxu1 %v2759_v27 }
  0x6a   : > { %2423 = vmatprep.subr.bf16.mxu1 %v2762_v30 }
  0x6b   : > { %2402 = vmatpush3.bf16.msra.mxu0 %v2761_v29 }
  0x6c   : > { %2431 = vmatprep.subr.bf16.mxu0 %v2764_v36 }
  0x6d   : > { %2424 = vmatpush3.bf16.msra.mxu1 %v2763_v33 }
  0x6e   : > { %729 = vmatmul.mubr.bf16.vlgmr.msra.gmra.mrb[0].mxu0 %v286_v35  ;;  %2518 = vmatprep.subr.bf16.mxu1 %v3055_v44 }
  0x6f   : > { %2432 = vmatpush3.bf16.msra.mxu0 %v2765_v39  ;;  %808 = vmatprep.mubr.bf16.mxu0 %v291_v56 }
  0x70   : > { %769 = vmatmul.mubr.bf16.vlgmr.msra.gmra.mrb[0].mxu1 %v288_v41  ;;  %2433 = vmatprep.subr.bf16.mxu0 %v2766_v42  ;;  %v2796_v41 = vld [vmem:[#allocation2 + $0x78] sm:$0xff]   ;;  %v2797_v42 = vld [vmem:[#allocation2 + $0x80] sm:$0xff]  }
  0x71   : > { %2520 = vmatprep.mubr.msk.bf16.mxu1 %vm3056_vm0, %v3055_v44  ;;  %2519 = vmatpush3.bf16.msra.mxu1 %v2780_v53 }
  0x72   : > { %2524 = vmatprep.subr.bf16.mxu1 %v3055_v44 }
  0x73   : > { %2434 = vmatpush3.bf16.msra.mxu0 %v2767_v43  ;;  %v2798_v43 = vld [vmem:[#allocation2 + $0x88] sm:$0xff]  }
  0x74   : > { %2435 = vmatprep.subr.bf16.mxu0 %v2768_v45  ;;  %v2799_v45 = vld [vmem:[#allocation2 + $0x90] sm:$0xff]  }
  0x77   : > { %2436 = vmatpush3.bf16.msra.mxu0 %v2769_v46  ;;  %v2800_v46 = vld [vmem:[#allocation2 + $0x98] sm:$0xff]  }
  0x78   : > { %2437 = vmatprep.subr.bf16.mxu0 %v2770_v47  ;;  %2521 = vmatmul.mubr.msk.bf16.vlgmr.msra.gmra.mrb[4].mxu1 %vm692_vm1, %v292_v58  ;;  %v2801_v47 = vld [vmem:[#allocation2 + $0xa0] sm:$0xff]   ;;  %v2804_v58 = vld [vmem:[#allocation2 + $0xb8] sm:$0xff]  }
  0x79   : > { %2540 = vmatprep.mubr.msk.bf16.mxu1 %vm3056_vm0, %v3055_v44  ;;  %2525 = vmatpush3.bf16.msra.mxu1 %v2781_v0  ;;  %v2810_v0 = vld [vmem:[#allocation2 + $0xe8] sm:$0xff]  }
  0x7a   : > { %2526 = vmatprep.subr.bf16.mxu1 %v3055_v44 }
  0x7b   : > { %2438 = vmatpush3.bf16.msra.mxu0 %v2771_v48  ;;  %v2802_v48 = vld [vmem:[#allocation2 + $0xa8] sm:$0xff]  }
  0x7c   : > { %2439 = vmatprep.subr.bf16.mxu0 %v2772_v49  ;;  %v2269_v49 = vld [vmem:[%s3705_s4 + $0x1] ss:$0 sm:$0xff] }
  0x7d   : > { %2527 = vmatpush3.bf16.msra.mxu1 %v2782_v1  ;;  %v2811_v1 = vld [vmem:[#allocation2 + $0xf0] sm:$0xff]  }
  0x7e   : > { %2528 = vmatprep.subr.bf16.mxu1 %v3055_v44 }
  0x7f   : > { %2440 = vmatpush3.bf16.msra.mxu0 %v2773_v50 }
  0x80   : > { %2441 = vmatprep.subr.bf16.mxu0 %v2774_v51 }
  0x81   : > { %2529 = vmatpush3.bf16.msra.mxu1 %v2783_v2  ;;  %v2279_v2 = vld [vmem:[%s3705_s4 + $0x2] ss:$0 sm:$0xff] }
  0x82   : > { %2530 = vmatprep.subr.bf16.mxu1 %v3055_v44 }
  0x83   : > { %2442 = vmatpush3.bf16.msra.mxu0 %v2775_v52 }
  0x84   : > { %2443 = vmatprep.subr.bf16.mxu0 %v2776_v55 }
  0x85   : > { %2531 = vmatpush3.bf16.msra.mxu1 %v2784_v3 }
  0x86   : > { %2532 = vmatprep.subr.bf16.mxu1 %v3055_v44 }
  0x87   : > { %2444 = vmatpush3.bf16.msra.mxu0 %v2777_v59  ;;  %v2805_v59 = vld [vmem:[#allocation2 + $0xc0] sm:$0xff]  }
  0x88   : > { %2445 = vmatprep.subr.bf16.mxu0 %v2778_v60  ;;  %v2806_v60 = vld [vmem:[#allocation2 + $0xc8] sm:$0xff]  }
  0x89   : > { %2533 = vmatpush3.bf16.msra.mxu1 %v2785_v4 }
  0x8a   : > { %2534 = vmatprep.subr.bf16.mxu1 %v3055_v44 }
  0x8b   : > { %2446 = vmatpush3.bf16.msra.mxu0 %v2779_v61  ;;  %v2807_v61 = vld [vmem:[#allocation2 + $0xd0] sm:$0xff]  }
  0x8c   : > { %2544 = vmatprep.subr.bf16.mxu0 %v3055_v44 }
  0x8d   : > { %2535 = vmatpush3.bf16.msra.mxu1 %v2786_v5 }
  0x8e   : > { %809 = vmatmul.mubr.bf16.vlgmr.msra.gmra.mrb[4].mxu0 %v290_v63  ;;  %2536 = vmatprep.subr.bf16.mxu1 %v3055_v44  ;;  %v2809_v63 = vld [vmem:[#allocation2 + $0xe0] sm:$0xff]  }
  0x8f   : > { %2560 = vmatprep.mubr.msk.bf16.mxu0 %vm3056_vm0, %v3055_v44  ;;  %2545 = vmatpush3.bf16.msra.mxu0 %v2789_v8 }
  0x90   : > { %2546 = vmatprep.subr.bf16.mxu0 %v3055_v44 }
  0x91   : > { %2537 = vmatpush3.bf16.msra.mxu1 %v2787_v6 }
  0x92   : > { %2538 = vmatprep.subr.bf16.mxu1 %v3055_v44 }
  0x93   : > { %2547 = vmatpush3.bf16.msra.mxu0 %v2790_v9 }
  0x94   : > { %2548 = vmatprep.subr.bf16.mxu0 %v3055_v44 }
  0x95   : > { %2539 = vmatpush3.bf16.msra.mxu1 %v2788_v7 }
  0x96   : > { %2564 = vmatprep.subr.bf16.mxu1 %v3055_v44 }
  0x97   : > { %2549 = vmatpush3.bf16.msra.mxu0 %v2791_v10  ;;  %v2812_v10 = vld [vmem:[#allocation2 + $0xf8] sm:$0xff]  }
  0x98   : > { %2550 = vmatprep.subr.bf16.mxu0 %v3055_v44 }
  0x9b   : > { %2551 = vmatpush3.bf16.msra.mxu0 %v2792_v11  ;;  %v2813_v11 = vld [vmem:[#allocation2 + $0x100] sm:$0xff]  }
  0x9c   : > { %2552 = vmatprep.subr.bf16.mxu0 %v3055_v44 }
  0x9f   : > { %2553 = vmatpush3.bf16.msra.mxu0 %v2793_v12  ;;  %v2814_v12 = vld [vmem:[#allocation2 + $0x108] sm:$0xff]  }
  0xa0   : > { %2554 = vmatprep.subr.bf16.mxu0 %v3055_v44 }
  0xa3   : > { %2555 = vmatpush3.bf16.msra.mxu0 %v2794_v13  ;;  %v2815_v13 = vld [vmem:[#allocation2 + $0x110] sm:$0xff]  }
  0xa4   : > { %2556 = vmatprep.subr.bf16.mxu0 %v3055_v44 }
  0xa7   : > { %2557 = vmatpush3.bf16.msra.mxu0 %v2795_v40  ;;  %v2827_v40 = vld [vmem:[#allocation2 + $0x170] sm:$0xff]  }
  0xa8   : > { %2558 = vmatprep.subr.bf16.mxu0 %v3055_v44 }
  0xab   : > { %2559 = vmatpush3.bf16.msra.mxu0 %v2796_v41  ;;  %v2828_v41 = vld [vmem:[#allocation2 + $0x178] sm:$0xff]  }
  0xac   : > { %2584 = vmatprep.subr.bf16.mxu0 %v3055_v44 }
 0x141   : > { %v2403_v14 = vpop.f32.mrb[0].mxu0 }
 0x142   : > { %v2404_v16 = vpop.f32.mrb[1].mxu0 }
 0x143   : > { %v2405_v17 = vadd.f32 %v2404_v16, %v2403_v14  ;;  %v2406_v18 = vpop.f32.mrb[2].mxu0  ;;  %v2425_v19 = vpop.f32.mrb[0].mxu1  ;;  %v2816_v14 = vld [vmem:[#allocation2 + $0x118] sm:$0xff]   ;;  %v2818_v16 = vld [vmem:[#allocation2 + $0x128] sm:$0xff]  }
 0x144   : > { %v2407_v20 = vpop.f32.mrb[3].mxu0  ;;  %v2426_v22 = vpop.f32.mrb[1].mxu1 }
 0x145   : > { %v731_v21 = vadd.f32 %v2405_v17, %v2217_v15  ;;  %v2427_v23 = vadd.f32 %v2426_v22, %v2425_v19  ;;  %v2428_v24 = vpop.f32.mrb[2].mxu1  ;;  %v2817_v15 = vld [vmem:[#allocation2 + $0x120] sm:$0xff]  }
 0x146   : > { %v2429_v25 = vpop.f32.mrb[3].mxu1  ;;  %v2289_v17 = vld [vmem:[%s3705_s4 + $0x3] ss:$0 sm:$0xff]  ;;  %v2819_v24 = vld [vmem:[#allocation2 + $0x130] sm:$0xff]  }
 0x147   : > { %v771_v26 = vadd.f32 %v2427_v23, %v731_v21  ;;  %v2820_v25 = vld [vmem:[#allocation2 + $0x138] sm:$0xff]  }
 0x14b   : > { %v850_v27 = vpop.f32.mrb[4].mxu1 }
 0x14c   : > { %v2522_v28 = vpop.f32.mrb[5].mxu1 }
 0x14d   : > { %v853_v29 = vpop.f32.mrb[6].mxu1  ;;  %v2823_v28 = vld [vmem:[#allocation2 + $0x150] sm:$0xff]  }
 0x14e   : > { %v2523_v30 = vpop.f32.mrb[7].mxu1  ;;  %v2824_v29 = vld [vmem:[#allocation2 + $0x158] sm:$0xff]  }
 0x14f   : > { %v2825_v30 = vld [vmem:[#allocation2 + $0x160] sm:$0xff]  }
 0x161   : > { %v2447_v31 = vpop.f32.mrb[4].mxu0 }
 0x162   : > { %v2448_v32 = vpop.f32.mrb[5].mxu0 }
 0x163   : > { %v2449_v33 = vadd.f32 %v2448_v32, %v2447_v31  ;;  %v2450_v34 = vpop.f32.mrb[6].mxu0  ;;  %v2826_v31 = vld [vmem:[#allocation2 + $0x168] sm:$0xff]   ;;  %v2299_v32 = vld [vmem:[%s3705_s4 + $0x4] ss:$0 sm:$0xff] }
 0x164   : > { %v2451_v35 = vpop.f32.mrb[7].mxu0 }
 0x165   : > { %v811_v36 = vadd.f32 %v2449_v33, %v771_v26  ;;  %v2821_v26 = vld [vmem:[#allocation2 + $0x140] sm:$0xff]  }
 0x167   : > { %v851_v37 = vadd.f32 %v850_v27, %v811_v36  ;;  %v2822_v27 = vld [vmem:[#allocation2 + $0x148] sm:$0xff]  }
 0x169   : > { %v856_v38 = vmax.f32 %v851_v37, 0.0 }
 0x16b   : > { %v857_v39 = vpack.c.bf16 %v856_v38, %v856_v38 }
 0x16d   : > { %2541 = vmatmul.mubr.bf16.vlgmr.msra.gmra.mrb[8].mxu1 %v857_v39 }
 0x16e   : > { %2580 = vmatprep.mubr.msk.bf16.mxu1 %vm3056_vm0, %v3055_v44  ;;  %2565 = vmatpush3.bf16.msra.mxu1 %v2797_v42  ;;  %v2829_v42 = vld [vmem:[%s3704_s3] ss:$28 sps:$4 sm:$0xff]  }
 0x16f   : > { %2566 = vmatprep.subr.bf16.mxu1 %v3055_v44 }
 0x172   : > { %2567 = vmatpush3.bf16.msra.mxu1 %v2798_v43  ;;  %v2831_v43 = vld [vmem:[%s3704_s3 + $0x4] ss:$28 sps:$4 sm:$0xff]  }
 0x173   : > { %2568 = vmatprep.subr.bf16.mxu1 %v3055_v44 }
 0x176   : > { %2569 = vmatpush3.bf16.msra.mxu1 %v2799_v45  ;;  %v2834_v45 = vld [vmem:[%s3704_s3 + $0xc] ss:$28 sps:$4 sm:$0xff]  }
 0x177   : > { %2570 = vmatprep.subr.bf16.mxu1 %v3055_v44 }
 0x17a   : > { %2571 = vmatpush3.bf16.msra.mxu1 %v2800_v46  ;;  %v2837_v46 = vld [vmem:[%s3704_s3 + $0x3c] ss:$28 sps:$4 sm:$0xff]  }
 0x17b   : > { %2572 = vmatprep.subr.bf16.mxu1 %v3055_v44 }
 0x17e   : > { %2573 = vmatpush3.bf16.msra.mxu1 %v2801_v47  ;;  %v2835_v47 = vld [vmem:[%s3704_s3 + $0x38] ss:$28 sps:$4 sm:$0xff]  }
 0x17f   : > { %2574 = vmatprep.subr.bf16.mxu1 %v3055_v44 }
 0x182   : > { %2575 = vmatpush3.bf16.msra.mxu1 %v2802_v48  ;;  %v2843_v48 = vld [vmem:[%s3704_s3 + $0x74] ss:$28 sps:$4 sm:$0xff]  }
 0x183   : > { %2576 = vmatprep.subr.bf16.mxu1 %v3055_v44 }
 0x186   : > { %2577 = vmatpush3.bf16.msra.mxu1 %v2803_v57  ;;  %v2865_v57 = vld [vmem:[%s3704_s3 + $0x150] ss:$28 sps:$4 sm:$0xff]  }
 0x187   : > { %2578 = vmatprep.subr.bf16.mxu1 %v3055_v44 }
 0x18a   : > { %2579 = vmatpush3.bf16.msra.mxu1 %v2804_v58  ;;  %v2309_v58 = vld [vmem:[%s3705_s4 + $0x5] ss:$0 sm:$0xff] }
 0x18b   : > { %2604 = vmatprep.subr.bf16.mxu1 %v3055_v44 }
 0x240   : > { %v964_v50 = vpop.f32.mrb[8].mxu1 }
 0x241   : > { %v965_v51 = vadd.f32 %v2269_v49, %v964_v50  ;;  %v2542_v52 = vpop.f32.mrb[9].mxu1  ;;  %v2841_v49 = vld [vmem:[%s3704_s3 + $0x70] ss:$28 sps:$4 sm:$0xff]  }
 0x242   : > { %v967_v53 = vpop.f32.mrb[10].mxu1  ;;  %v2849_v50 = vld [vmem:[%s3704_s3 + $0xac] ss:$28 sps:$4 sm:$0xff]   ;;  %v2855_v52 = vld [vmem:[%s3704_s3 + $0xe4] ss:$28 sps:$4 sm:$0xff]  }
 0x243   : > { %v970_v54 = vmax.f32 %v965_v51, 0.0  ;;  %v2543_v55 = vpop.f32.mrb[11].mxu1  ;;  %v2847_v51 = vld [vmem:[%s3704_s3 + $0xa8] ss:$28 sps:$4 sm:$0xff]   ;;  %v2853_v53 = vld [vmem:[%s3704_s3 + $0xe0] ss:$28 sps:$4 sm:$0xff]  }
 0x244   : > { %v2859_v55 = vld [vmem:[%s3704_s3 + $0x118] ss:$28 sps:$4 sm:$0xff]  }
 0x245   : > { %v971_v56 = vpack.c.bf16 %v970_v54, %v970_v54  ;;  %v2861_v54 = vld [vmem:[%s3704_s3 + $0x11c] ss:$28 sps:$4 sm:$0xff]  }
 0x247   : > { %2561 = vmatmul.mubr.bf16.vlgmr.msra.gmra.mrb[8].mxu0 %v971_v56  ;;  %v2867_v56 = vld [vmem:[%s3704_s3 + $0x154] ss:$28 sps:$4 sm:$0xff]  }
 0x248   : > { %2600 = vmatprep.mubr.msk.bf16.mxu0 %vm3056_vm0, %v3055_v44  ;;  %2585 = vmatpush3.bf16.msra.mxu0 %v2805_v59 }
 0x249   : > { %2586 = vmatprep.subr.bf16.mxu0 %v3055_v44 }
 0x24c   : > { %2587 = vmatpush3.bf16.msra.mxu0 %v2806_v60 }
 0x24d   : > { %2588 = vmatprep.subr.bf16.mxu0 %v3055_v44 }
 0x250   : > { %2589 = vmatpush3.bf16.msra.mxu0 %v2807_v61 }
 0x251   : > { %2590 = vmatprep.subr.bf16.mxu0 %v3055_v44 }
 0x254   : > { %2591 = vmatpush3.bf16.msra.mxu0 %v2808_v62 }
 0x255   : > { %2592 = vmatprep.subr.bf16.mxu0 %v3055_v44 }
 0x258   : > { %2593 = vmatpush3.bf16.msra.mxu0 %v2809_v63 }
 0x259   : > { %2594 = vmatprep.subr.bf16.mxu0 %v3055_v44 }
 0x25c   : > { %2595 = vmatpush3.bf16.msra.mxu0 %v2810_v0 }
 0x25d   : > { %2596 = vmatprep.subr.bf16.mxu0 %v3055_v44 }
 0x260   : > { %2597 = vmatpush3.bf16.msra.mxu0 %v2811_v1  ;;  %v2832_v1 = vld [vmem:[%s3704_s3 + $0x8] ss:$28 sps:$4 sm:$0xff]  }
 0x261   : > { %2598 = vmatprep.subr.bf16.mxu0 %v3055_v44 }
 0x264   : > { %2599 = vmatpush3.bf16.msra.mxu0 %v2812_v10  ;;  %v2856_v10 = vld [vmem:[%s3704_s3 + $0xe8] ss:$28 sps:$4 sm:$0xff]  }
 0x265   : > { %2624 = vmatprep.subr.bf16.mxu0 %v3055_v44 }
 0x31a   : > { %v1079_v3 = vpop.f32.mrb[8].mxu0 }
 0x31b   : > { %v1080_v4 = vadd.f32 %v2279_v2, %v1079_v3  ;;  %v2562_v5 = vpop.f32.mrb[9].mxu0  ;;  %v2840_v3 = vld [vmem:[%s3704_s3 + $0x44] ss:$28 sps:$4 sm:$0xff]  }
 0x31c   : > { %v1082_v6 = vpop.f32.mrb[10].mxu0  ;;  %v2846_v5 = vld [vmem:[%s3704_s3 + $0x7c] ss:$28 sps:$4 sm:$0xff]  }
 0x31d   : > { %v1085_v7 = vmax.f32 %v1080_v4, 0.0  ;;  %v2563_v8 = vpop.f32.mrb[11].mxu0  ;;  %v2838_v4 = vld [vmem:[%s3704_s3 + $0x40] ss:$28 sps:$4 sm:$0xff]   ;;  %v2844_v6 = vld [vmem:[%s3704_s3 + $0x78] ss:$28 sps:$4 sm:$0xff]  }
 0x31e   : > { %v2850_v8 = vld [vmem:[%s3704_s3 + $0xb0] ss:$28 sps:$4 sm:$0xff]  }
 0x31f   : > { %v1086_v9 = vpack.c.bf16 %v1085_v7, %v1085_v7  ;;  %v2852_v7 = vld [vmem:[%s3704_s3 + $0xb4] ss:$28 sps:$4 sm:$0xff]  }
 0x321   : > { %2581 = vmatmul.mubr.bf16.vlgmr.msra.gmra.mrb[12].mxu1 %v1086_v9  ;;  %v2858_v9 = vld [vmem:[%s3704_s3 + $0xec] ss:$28 sps:$4 sm:$0xff]  }
 0x322   : > { %2620 = vmatprep.mubr.msk.bf16.mxu1 %vm3056_vm0, %v3055_v44  ;;  %2605 = vmatpush3.bf16.msra.mxu1 %v2813_v11  ;;  %v2864_v11 = vld [vmem:[%s3704_s3 + $0x124] ss:$28 sps:$4 sm:$0xff]  }
 0x323   : > { %2606 = vmatprep.subr.bf16.mxu1 %v3055_v44 }
 0x326   : > { %2607 = vmatpush3.bf16.msra.mxu1 %v2814_v12  ;;  %v2862_v12 = vld [vmem:[%s3704_s3 + $0x120] ss:$28 sps:$4 sm:$0xff]  }
 0x327   : > { %2608 = vmatprep.subr.bf16.mxu1 %v3055_v44 }
 0x32a   : > { %2609 = vmatpush3.bf16.msra.mxu1 %v2815_v13  ;;  %v2870_v13 = vld [vmem:[%s3704_s3 + $0x15c] ss:$28 sps:$4 sm:$0xff]  }
 0x32b   : > { %2610 = vmatprep.subr.bf16.mxu1 %v3055_v44 }
 0x32e   : > { %2611 = vmatpush3.bf16.msra.mxu1 %v2816_v14  ;;  %v2868_v14 = vld [vmem:[%s3704_s3 + $0x158] ss:$28 sps:$4 sm:$0xff]  }
 0x32f   : > { %2612 = vmatprep.subr.bf16.mxu1 %v3055_v44 }
 0x332   : > { %2613 = vmatpush3.bf16.msra.mxu1 %v2817_v15  ;;  %v2873_v15 = vld [vmem:[%s3704_s3 + $0x18c] ss:$28 sps:$4 sm:$0xff]  }
 0x333   : > { %2614 = vmatprep.subr.bf16.mxu1 %v3055_v44 }
 0x336   : > { %2615 = vmatpush3.bf16.msra.mxu1 %v2818_v16  ;;  %v2876_v16 = vld [vmem:[%s3704_s3 + $0x194] ss:$28 sps:$4 sm:$0xff]  }
 0x337   : > { %2616 = vmatprep.subr.bf16.mxu1 %v3055_v44 }
 0x33a   : > { %2617 = vmatpush3.bf16.msra.mxu1 %v2819_v24 }
 0x33b   : > { %2618 = vmatprep.subr.bf16.mxu1 %v3055_v44 }
 0x33e   : > { %2619 = vmatpush3.bf16.msra.mxu1 %v2820_v25 }
 0x33f   : > { %1935 = vmatprep.subr.bf16.mxu1 %v2831_v43  ;;  %v2899_v43 = vld [vmem:[%s3704_s3 + $0x12c] ss:$28 sps:$4 sm:$0xff]  }
 0x3f4   : > { %v1194_v18 = vpop.f32.mrb[12].mxu1 }
 0x3f5   : > { %v1195_v19 = vadd.f32 %v2289_v17, %v1194_v18  ;;  %v2582_v20 = vpop.f32.mrb[13].mxu1  ;;  %v2871_v17 = vld [vmem:[%s3704_s3 + $0x188] ss:$28 sps:$4 sm:$0xff]   ;;  %v2874_v18 = vld [vmem:[%s3704_s3 + $0x190] ss:$28 sps:$4 sm:$0xff]  }
 0x3f6   : > { %v1197_v21 = vpop.f32.mrb[14].mxu1  ;;  %v3057_v20 = vmov 0  }
 0x3f7   : > { %v1200_v22 = vpack.c.bf16 %v1195_v19, %v1195_v19  ;;  %v2583_v23 = vpop.f32.mrb[15].mxu1  ;;  %v2879_v19 = vld [vmem:[%s3704_s3 + $0x14] ss:$28 sps:$4 sm:$0xff]   ;;  %v2319_v21 = vld [vmem:[%s3705_s4 + $0x6] ss:$0 sm:$0xff] }
 0x3f9   : > { %2601 = vmatmul.mubr.bf16.vlgmr.msra.gmra.mrb[12].mxu0 %v1200_v22 }
 0x3fa   : > { %2640 = vmatprep.mubr.msk.bf16.mxu0 %vm3056_vm0, %v3055_v44  ;;  %2625 = vmatpush3.bf16.msra.mxu0 %v2821_v26 }
 0x3fb   : > { %2626 = vmatprep.subr.bf16.mxu0 %v3055_v44 }
 0x3fe   : > { %2627 = vmatpush3.bf16.msra.mxu0 %v2822_v27 }
 0x3ff   : > { %2628 = vmatprep.subr.bf16.mxu0 %v3055_v44 }
 0x402   : > { %2629 = vmatpush3.bf16.msra.mxu0 %v2823_v28  ;;  %v2877_v28 = vld [vmem:[%s3704_s3 + $0x10] ss:$28 sps:$4 sm:$0xff]  }
 0x403   : > { %2630 = vmatprep.subr.bf16.mxu0 %v3055_v44 }
 0x406   : > { %2631 = vmatpush3.bf16.msra.mxu0 %v2824_v29  ;;  %v2880_v29 = vld [vmem:[%s3704_s3 + $0x18] ss:$28 sps:$4 sm:$0xff]  }
 0x407   : > { %2632 = vmatprep.subr.bf16.mxu0 %v3055_v44 }
 0x40a   : > { %2633 = vmatpush3.bf16.msra.mxu0 %v2825_v30 }
 0x40b   : > { %2634 = vmatprep.subr.bf16.mxu0 %v3055_v44 }
 0x40e   : > { %2635 = vmatpush3.bf16.msra.mxu0 %v2826_v31  ;;  %v2883_v31 = vld [vmem:[%s3704_s3 + $0x4c] ss:$28 sps:$4 sm:$0xff]  }
 0x40f   : > { %2636 = vmatprep.subr.bf16.mxu0 %v3055_v44 }
 0x412   : > { %2637 = vmatpush3.bf16.msra.mxu0 %v2827_v40  ;;  %v2895_v40 = vld [vmem:[%s3704_s3 + $0xf4] ss:$28 sps:$4 sm:$0xff]  }
 0x413   : > { %2638 = vmatprep.subr.bf16.mxu0 %v3055_v44 }
 0x416   : > { %2639 = vmatpush3.bf16.msra.mxu0 %v2828_v41  ;;  %v2893_v41 = vld [vmem:[%s3704_s3 + $0xf0] ss:$28 sps:$4 sm:$0xff]  }
 0x417   : > { %1976 = vmatprep.subr.bf16.mxu0 %v2834_v45  ;;  %v2897_v45 = vld [vmem:[%s3704_s3 + $0x128] ss:$28 sps:$4 sm:$0xff]  }
 0x4cc   : > { %v1308_v33 = vpop.f32.mrb[12].mxu0 }
 0x4cd   : > { %v1309_v34 = vadd.f32 %v2299_v32, %v1308_v33  ;;  %v2602_v35 = vpop.f32.mrb[13].mxu0  ;;  %v2881_v32 = vld [vmem:[%s3704_s3 + $0x48] ss:$28 sps:$4 sm:$0xff]   ;;  %v2884_v33 = vld [vmem:[%s3704_s3 + $0x50] ss:$28 sps:$4 sm:$0xff]  }
 0x4ce   : > { %v1311_v36 = vpop.f32.mrb[14].mxu0  ;;  %v2885_v35 = vld [vmem:[%s3704_s3 + $0x80] ss:$28 sps:$4 sm:$0xff]  }
 0x4cf   : > { %v1314_v37 = vmax.f32 %v1309_v34, 0.0  ;;  %v2603_v38 = vpop.f32.mrb[15].mxu0  ;;  %v2887_v34 = vld [vmem:[%s3704_s3 + $0x84] ss:$28 sps:$4 sm:$0xff]  }
 0x4d0   : > { %v2888_v36 = vld [vmem:[%s3704_s3 + $0x88] ss:$28 sps:$4 sm:$0xff]   ;;  %v2889_v38 = vld [vmem:[%s3704_s3 + $0xb8] ss:$28 sps:$4 sm:$0xff]  }
 0x4d1   : > { %v1315_v39 = vpack.c.bf16 %v1314_v37, %v1314_v37  ;;  %v2891_v37 = vld [vmem:[%s3704_s3 + $0xbc] ss:$28 sps:$4 sm:$0xff]  }
 0x4d3   : > { %2621 = vmatmul.mubr.bf16.vlgmr.msra.gmra.mrb[16].mxu1 %v1315_v39  ;;  %v2892_v39 = vld [vmem:[%s3704_s3 + $0xc0] ss:$28 sps:$4 sm:$0xff]  }
 0x4d4   : > { %1936 = vmatpush1.bf16.msra.mxu1 %v2829_v42  ;;  %1967 = vmatprep.mubr.bf16.mxu1 %v3057_v20  ;;  %v2896_v42 = vld [vmem:[%s3704_s3 + $0xf8] ss:$28 sps:$4 sm:$0xff]  }
 0x4d5   : > { %1937 = vmatprep.subr.bf16.mxu1 %v2837_v46  ;;  %v2900_v46 = vld [vmem:[%s3704_s3 + $0x130] ss:$28 sps:$4 sm:$0xff]  }
 0x4d8   : > { %1938 = vmatpush1.bf16.msra.mxu1 %v2835_v47  ;;  %v2903_v47 = vld [vmem:[%s3704_s3 + $0x164] ss:$28 sps:$4 sm:$0xff]  }
 0x4d9   : > { %1939 = vmatprep.subr.bf16.mxu1 %v2843_v48  ;;  %v2901_v48 = vld [vmem:[%s3704_s3 + $0x160] ss:$28 sps:$4 sm:$0xff]  }
 0x4dc   : > { %1940 = vmatpush1.bf16.msra.mxu1 %v2841_v49  ;;  %v2904_v49 = vld [vmem:[%s3704_s3 + $0x168] ss:$28 sps:$4 sm:$0xff]  }
 0x4dd   : > { %1941 = vmatprep.subr.bf16.mxu1 %v2849_v50  ;;  %v2907_v50 = vld [vmem:[%s3704_s3 + $0x19c] ss:$28 sps:$4 sm:$0xff]  }
 0x4e0   : > { %1942 = vmatpush1.bf16.msra.mxu1 %v2847_v51  ;;  %v2905_v51 = vld [vmem:[%s3704_s3 + $0x198] ss:$28 sps:$4 sm:$0xff]  }
 0x4e1   : > { %1943 = vmatprep.subr.bf16.mxu1 %v2855_v52  ;;  %v2908_v52 = vld [vmem:[%s3704_s3 + $0x1a0] ss:$28 sps:$4 sm:$0xff]  }
 0x4e4   : > { %1944 = vmatpush1.bf16.msra.mxu1 %v2853_v53  ;;  %v1612_v53 = vlaneseq }
 0x4e5   : > { %1945 = vmatprep.subr.bf16.mxu1 %v2861_v54 }
 0x4e6   : > { %v1613_v54 = vshrl.u32 %v1612_v53, 7 }
 0x4e8   : > { %1946 = vmatpush1.bf16.msra.mxu1 %v2859_v55  ;;  %v1614_v55 = vsub.s32 0, %v1613_v54 }
 0x4e9   : > { %1947 = vmatprep.subr.bf16.mxu1 %v2867_v56  ;;  %v1622_v56 = vsub.s32 2, %v1613_v54 }
 0x4ec   : > { %1948 = vmatpush1.bf16.msra.mxu1 %v2865_v57  ;;  %v1610_v57 = vld [vmem:[#allocation5] sm:$0x7f] }
 0x4ed   : > { %1949 = vmatprep.subr.bf16.mxu1 %v2873_v15  ;;  %v1630_v15 = vsub.s32 4, %v1613_v54 }
 0x4f0   : > { %1950 = vmatpush1.bf16.msra.mxu1 %v2871_v17  ;;  %v1634_v17 = vsub.s32 5, %v1613_v54 }
 0x4f1   : > { %2017 = vmatprep.subr.bf16.mxu1 %v2879_v19 }
 0x5a6   : > { %v1423_v59 = vpop.f32.mrb[16].mxu1 }
 0x5a7   : > { %v1424_v60 = vadd.f32 %v2309_v58, %v1423_v59  ;;  %v2622_v61 = vpop.f32.mrb[17].mxu1  ;;  %v1618_v58 = vsub.s32 1, %v1613_v54  ;;  %v1626_v59 = vsub.s32 3, %v1613_v54 }
 0x5a8   : > { %v1426_v62 = vpop.f32.mrb[18].mxu1  ;;  %v1623_v61 = vrot.slane %v1610_v57, %v1622_v56 }
 0x5a9   : > { %v1429_v63 = vmax.f32 %v1424_v60, 0.0  ;;  %v2623_v0 = vpop.f32.mrb[19].mxu1  ;;  %v1615_v60 = vrot.slane %v1610_v57, %v1614_v55  ;;  %v1619_v62 = vrot.slane %v1610_v57, %v1618_v58 }
 0x5ab   : > { %v1430_v2 = vpack.c.bf16 %v1429_v63, %v1429_v63  ;;  %v1627_v63 = vrot.slane %v1610_v57, %v1626_v59 }
 0x5ad   : > { %2641 = vmatmul.mubr.bf16.vlgmr.msra.gmra.mrb[16].mxu0 %v1430_v2 }
 0x5ae   : > { %1977 = vmatpush1.bf16.msra.mxu0 %v2832_v1  ;;  %2008 = vmatprep.mubr.bf16.mxu0 %v3057_v20 }
 0x5af   : > { %1978 = vmatprep.subr.bf16.mxu0 %v2840_v3 }
 0x5b2   : > { %1979 = vmatpush1.bf16.msra.mxu0 %v2838_v4 }
 0x5b3   : > { %1980 = vmatprep.subr.bf16.mxu0 %v2846_v5 }
 0x5b6   : > { %1981 = vmatpush1.bf16.msra.mxu0 %v2844_v6 }
 0x5b7   : > { %1982 = vmatprep.subr.bf16.mxu0 %v2852_v7 }
 0x5ba   : > { %1983 = vmatpush1.bf16.msra.mxu0 %v2850_v8 }
 0x5bb   : > { %1984 = vmatprep.subr.bf16.mxu0 %v2858_v9 }
 0x5be   : > { %1985 = vmatpush1.bf16.msra.mxu0 %v2856_v10 }
 0x5bf   : > { %1986 = vmatprep.subr.bf16.mxu0 %v2864_v11 }
 0x5c2   : > { %1987 = vmatpush1.bf16.msra.mxu0 %v2862_v12 }
 0x5c3   : > { %1988 = vmatprep.subr.bf16.mxu0 %v2870_v13 }
 0x5c6   : > { %1989 = vmatpush1.bf16.msra.mxu0 %v2868_v14 }
 0x5c7   : > { %1990 = vmatprep.subr.bf16.mxu0 %v2876_v16  ;;  %v1638_v16 = vsub.s32 6, %v1613_v54 }
 0x5c9   : > { %v1639_v19 = vrot.slane %v1610_v57, %v1638_v16 }
 0x5ca   : > { %1991 = vmatpush1.bf16.msra.mxu0 %v2874_v18  ;;  %v1631_v18 = vrot.slane %v1610_v57, %v1630_v15 }
 0x5cb   : > { %2644 = vmatprep.subr.bf16.mxu0 %v3055_v44 }
 0x680   : > { %v1538_v22 = vpop.f32.mrb[16].mxu0 }
 0x681   : > { %v1539_v23 = vadd.f32 %v2319_v21, %v1538_v22  ;;  %v2642_v24 = vpop.f32.mrb[17].mxu0 }
 0x682   : > { %v1541_v25 = vpop.f32.mrb[18].mxu0 }
 0x683   : > { %v1544_v26 = vmax.f32 %v1539_v23, 0.0  ;;  %v2643_v27 = vpop.f32.mrb[19].mxu0 }
 0x685   : > { %v1545_v30 = vpack.c.bf16 %v1544_v26, %v1544_v26 }
 0x687   : > { %1968 = vmatmul.mubr.bf16.vlgmr.msra.gmra.mrb[20].mxu1 %v1545_v30  ;;  %2009 = vmatmul.mubr.bf16.vlgmr.msra.gmra.mrb[20].mxu0 %v1545_v30 }
 0x688   : > { %2018 = vmatpush1.bf16.msra.mxu1 %v2877_v28  ;;  %2645 = vmatpush3.bf16.msra.mxu0 %v2880_v29 }
 0x689   : > { %2019 = vmatprep.subr.bf16.mxu1 %v2883_v31  ;;  %2646 = vmatprep.subr.bf16.mxu0 %v3055_v44 }
 0x68a   : > { %2049 = vmatprep.mubr.bf16.mxu1 %v3057_v20  ;;  %2660 = vmatprep.mubr.msk.bf16.mxu0 %vm3056_vm0, %v3055_v44  ;;  %v1635_v20 = vrot.slane %v1610_v57, %v1634_v17 }
 0x68c   : > { %2020 = vmatpush1.bf16.msra.mxu1 %v2881_v32  ;;  %2647 = vmatpush3.bf16.msra.mxu0 %v2884_v33 }
 0x68d   : > { %2021 = vmatprep.subr.bf16.mxu1 %v2887_v34  ;;  %2648 = vmatprep.subr.bf16.mxu0 %v3055_v44 }
 0x690   : > { %2022 = vmatpush1.bf16.msra.mxu1 %v2885_v35  ;;  %2649 = vmatpush3.bf16.msra.mxu0 %v2888_v36 }
 0x691   : > { %2023 = vmatprep.subr.bf16.mxu1 %v2891_v37  ;;  %2650 = vmatprep.subr.bf16.mxu0 %v3055_v44 }
 0x694   : > { %2024 = vmatpush1.bf16.msra.mxu1 %v2889_v38  ;;  %2651 = vmatpush3.bf16.msra.mxu0 %v2892_v39 }
 0x695   : > { %2025 = vmatprep.subr.bf16.mxu1 %v2895_v40  ;;  %2652 = vmatprep.subr.bf16.mxu0 %v3055_v44 }
 0x698   : > { %2026 = vmatpush1.bf16.msra.mxu1 %v2893_v41  ;;  %2653 = vmatpush3.bf16.msra.mxu0 %v2896_v42 }
 0x699   : > { %2027 = vmatprep.subr.bf16.mxu1 %v2899_v43  ;;  %2654 = vmatprep.subr.bf16.mxu0 %v3055_v44 }
 0x69c   : > { %2028 = vmatpush1.bf16.msra.mxu1 %v2897_v45  ;;  %2655 = vmatpush3.bf16.msra.mxu0 %v2900_v46 }
 0x69d   : > { %2029 = vmatprep.subr.bf16.mxu1 %v2903_v47  ;;  %2656 = vmatprep.subr.bf16.mxu0 %v3055_v44 }
 0x6a0   : > { %2030 = vmatpush1.bf16.msra.mxu1 %v2901_v48  ;;  %2657 = vmatpush3.bf16.msra.mxu0 %v2904_v49 }
 0x6a1   : > { %2031 = vmatprep.subr.bf16.mxu1 %v2907_v50  ;;  %2658 = vmatprep.subr.bf16.mxu0 %v3055_v44 }
 0x6a4   : > { %2032 = vmatpush1.bf16.msra.mxu1 %v2905_v51  ;;  %2659 = vmatpush3.bf16.msra.mxu0 %v2908_v52 }
 0x6a7   : > { %2050 = vmatmul.mubr.bf16.vlgmr.msra.gmra.mrb[24].mxu1 %v1545_v30  ;;  %2661 = vmatmul.mubr.bf16.vlgmr.msra.gmra.mrb[24].mxu0 %v1545_v30 }
 0x75a   : > { %v1969_v0 = vpop.f32.mrb[20].mxu1  ;;  %v2010_v1 = vpop.f32.mrb[20].mxu0 }
 0x75b   : > { %v1970_v44 = vadd.f32 %v1969_v0, %v1615_v60  ;;  %v2011_v2 = vadd.f32 %v2010_v1, %v1623_v61  ;;  %v1971_v3 = vpop.f32.mrb[21].mxu1  ;;  %v2012_v4 = vpop.f32.mrb[21].mxu0 }
 0x75c   : > { %v1972_v5 = vadd.f32 %v1971_v3, %v1619_v62  ;;  %v2013_v6 = vadd.f32 %v2012_v4, %v1627_v63  ;;  %v1973_v7 = vpop.f32.mrb[22].mxu1  ;;  %v2014_v8 = vpop.f32.mrb[22].mxu0 }
 0x75d   : > { %2909 = vtanh.f32 %v1970_v44  ;;  %v1974_v9 = vpop.f32.mrb[23].mxu1  ;;  %v2015_v10 = vpop.f32.mrb[23].mxu0 }
 0x75e   : > { %2911 = vtanh.f32 %v2011_v2 }
 0x75f   : > { %2913 = vtanh.f32 %v1972_v5 }
 0x760   : > { %2915 = vtanh.f32 %v2013_v6 }
 0x767   : > { %v2910_v11 = vpop.eup %2909 }
 0x768   : > { %v2912_v12 = vpop.eup %2911  ;;  %2105 = vst [vmem:[%s3642_s20] sm:$0xff] %v2910_v11 }
 0x769   : > { %v2914_v13 = vpop.eup %2913  ;;  %2107 = vst [vmem:[%s3642_s20 + $0x10] sm:$0xff] %v2912_v12 }
 0x76a   : > { %v2916_v14 = vpop.eup %2915  ;;  %2106 = vst [vmem:[%s3642_s20 + $0x8] sm:$0xff] %v2914_v13 }
 0x76b   : > { %2108 = vst [vmem:[%s3642_s20 + $0x18] sm:$0xff] %v2916_v14 }
 0x77a   : > { %v2051_v21 = vpop.f32.mrb[24].mxu1  ;;  %v2092_v22 = vpop.f32.mrb[24].mxu0 }
 0x77b   : > { %v2052_v23 = vadd.f32 %v2051_v21, %v1631_v18  ;;  %v2093_v24 = vadd.f32 %v2092_v22, %v1639_v19  ;;  %v2053_v25 = vpop.f32.mrb[25].mxu1  ;;  %v2662_v26 = vpop.f32.mrb[25].mxu0 }
 0x77c   : > { %v2054_v27 = vadd.f32 %v2053_v25, %v1635_v20  ;;  %v2055_v28 = vpop.f32.mrb[26].mxu1  ;;  %v2095_v29 = vpop.f32.mrb[26].mxu0 }
 0x77d   : > { %2917 = vtanh.f32 %v2052_v23  ;;  %v2056_v30 = vpop.f32.mrb[27].mxu1  ;;  %v2663_v31 = vpop.f32.mrb[27].mxu0 }
 0x77e   : > { %2919 = vtanh.f32 %v2093_v24 }
 0x77f   : > { %2921 = vtanh.f32 %v2054_v27 }
 0x787   : > { %v2918_v32 = vpop.eup %2917 }
 0x788   : > { %v2920_v33 = vpop.eup %2919  ;;  %2109 = vst [vmem:[%s3642_s20 + $0x20] sm:$0xff] %v2918_v32 }
 0x789   : > { %v2922_v34 = vpop.eup %2921  ;;  %2111 = vst.msk [vmem:[%s3642_s20 + $0x30] sm:$0xff] %vm692_vm1, %v2920_v33 }
 0x78a   : > { %2110 = vst [vmem:[%s3642_s20 + $0x28] sm:$0xff] %v2922_v34 }
 0x78b   : > { %2992 = shalt.err (!%p2989_p11)
}
 0x78c   : > { %s2993_s16 = scalar_lea.hbm %s3654_s13, 896  ;;  %s2997_s19 = scalar_lea.hbm %s3707_s6, 7168 }
 0x78d   : > { %p2994_p13 = scmp.ne.s32.totalorder %s3654_s13, %s2993_s16  ;;  %p2998_p6 = scmp.lt.u32.totalorder %s3654_s13, %s3707_s6 }
 0x78e   : > { %p2999_p9 = scmp.lt.u32.totalorder %s2997_s19, %s2993_s16  ;;  %p3001_p10 = scmp.lt.u32.totalorder %s2993_s16, %s3654_s13 }
 0x78f   : > { %p2995_p0 = pnand %p2994_p13, %p3720_p1 }
 0x790   : > { %p3000_p12 = por %p2999_p9, %p2998_p6 }
 0x791   : > { %p2996_p5 = pneg %p2995_p0 }
 0x792   : > { %p3002_p2 = por %p3001_p10, %p3000_p12 }
 0x794   : > { %p3003_p3 = pnand %p3002_p2, %p2996_p5 }
 0x796   : > { %3006 = shalt.err (!%p3003_p3)
}
 0x797   : > { %2675 = dma.vmem_to_hbm [thread:$0]  (%p3720_p1), %s3656_s28, 896, %s3654_s13, %s2113_s25  }
 0x798 PF: > { %p2692_p4 = scmp.ge.s32.totalorder %s3049_s24, 2  ;;  %s2139_s26 = sand.u32 1, %s3037_s21  }
 0x799   : > { %p3721_p7 = scmp.ne.s32.totalorder %s3712_s8, 0  ;;  %s2140_s11 = scalar_lea.sflag [#allocation4], %s2139_s26 }
 0x79b   : > { %p2685_p8 = pnand %p2692_p4, %p3721_p7 }
 0x79d   : > { %3032 = dma.done.wait (!%p2685_p8), %s2140_s11, 896  }
 0x79e   : > { %3034 = vsyncadd (!%p2685_p8), %s2140_s11, 4294966400  ;;  %p18_p11 = scmp.ge.s32.totalorder %s3119_s27, 10   ;;  %s3722_s21 = smov %s3041_s22 }
 0x79f   : > { %s3723_s22 = smov %s3045_s23  ;;  %s3724_s23 = smov %s3130_s30 }
 0x7a0   : > { %s3725_s24 = smov %s3119_s27  ;;  %20 = sbr.rel (!%p18_p11) target bundleno = 5 (0x5), region = 99 }
 0x7a7   :  { %2145 = vsyncpa [#allocation3], 1 }
 0x7a8   :  { %2147 = vsyncpa [#allocation3 + $0x1], 1 }
 0x7a9   :  { %2148 = vsyncpa [#allocation6], 1 }
 0x7aa   :  { %2149 = vsyncpa [#allocation4], 1 }
 0x7ab   :  { %2151 = vsyncpa [#allocation4 + $0x1], 1 }

</bundles_post_ra>
